<compile_context>
chip_gen: v5e
topology: v5e:2x2
jax: 0.10.0
libtpu: 0.0.40
codegen_flags: <defaults>
</compile_context>

<pallas_src>
import functools

import jax
import jax.numpy as jnp
from jax.experimental import pallas as pl
from jax.experimental.pallas import tpu as pltpu


# ------------------------------------------------------------- hw budgets ----
def _vmem_capacity_bytes():
    """Physical VMEM per TensorCore; conservative 64 MiB if the query fails."""
    try:
        cap = getattr(pltpu.get_tpu_info(), "vmem_capacity_bytes", None)
        if cap:
            return int(cap)
    except Exception:
        pass
    return 64 << 20


def _clamp_vmem_limit(nbytes, cap):
    # Never request all of physical VMEM: leave ~25% for compiler-internal
    # scratch / double buffers (v7x: ~48 MiB of 64; v6e/v5e: up to ~96 of 128).
    return int(min(max(nbytes, 16 << 20), int(cap * 0.75)))


# ---------------------------------------------------------- fused kernel -----
def _se_fused_kernel(x_ref, w1_ref, w2_ref, o_ref, *, inv_l):
    """Whole-L slab resident: mean -> tiny MLP -> sigmoid -> rescale, one pass."""
    x = x_ref[...]                                                   # (Bt, C, L)
    y = jnp.sum(x, axis=-1, dtype=jnp.float32) * inv_l               # (Bt, C) f32
    h = jnp.maximum(
        jnp.dot(y, w1_ref[...], preferred_element_type=jnp.float32), 0.0)
    s = jax.nn.sigmoid(
        jnp.dot(h, w2_ref[...], preferred_element_type=jnp.float32))  # (Bt, C)
    o_ref[...] = x * s.astype(o_ref.dtype)[:, :, None]


# ------------------------------------------------------- two-pass kernels ----
def _se_gate_kernel(x_ref, w1_ref, w2_ref, s_ref, acc_ref, *, inv_l, n_chunks):
    """Accumulate the L-sum per (b, c); on the last L tile run the tiny MLP.

    Per-step work is pure VPU: each 128-lane chunk of the (Bt, C, Lt) tile is
    added elementwise into a (Bt, C, 128) f32 accumulator.  The single XLU
    cross-lane reduce and the lanes->sublanes relayout for the (Bt, C, 1)
    store happen once per batch tile, in the finalize branch.
    """
    li = pl.program_id(1)

    @pl.when(li == 0)
    def _init():
        acc_ref[...] = jnp.zeros_like(acc_ref)

    acc = acc_ref[...]
    for j in range(n_chunks):                      # static unroll, VPU adds
        acc = acc + x_ref[:, :, j * 128:(j + 1) * 128].astype(jnp.float32)
    acc_ref[...] = acc

    @pl.when(li == pl.num_programs(1) - 1)
    def _finalize():
        y = jnp.sum(acc_ref[...], axis=-1) * inv_l                   # (Bt, C)
        h = jnp.maximum(
            jnp.dot(y, w1_ref[...], preferred_element_type=jnp.float32), 0.0)
        s = jax.nn.sigmoid(
            jnp.dot(h, w2_ref[...], preferred_element_type=jnp.float32))
        s_ref[...] = s[:, :, None]                                   # (Bt, C, 1)


def _se_scale_kernel(x_ref, s_ref, o_ref):
    """o = x * s; s block is (Bt, C, 1): C stays on sublanes, lane splat only."""
    o_ref[...] = x_ref[...] * s_ref[...].astype(o_ref.dtype)


# ----------------------------------------------------------------- tiling ----
def _pick_fused_bt(B, C, L, itemsize, budget_bytes):
    """Largest divisor Bt of B whose double-buffered in+out slabs fit the
    budget, preferring >= 2 batch tiles (megacore).  None -> does not fit."""
    per_tile = C * L * itemsize
    for d in range(B, 0, -1):
        if B % d:
            continue
        if 4 * d * per_tile > budget_bytes:       # 2x in + 2x out buffers
            continue
        if B // d >= 2 or B == 1:
            return d
    return None


def _pick_two_pass_bt(B):
    """Divisor of B (<= 32) that leaves >= 2 batch tiles whenever possible."""
    for bt in (32, 16, 8, 4, 2, 1):
        if B % bt == 0 and B // bt >= 2:
            return bt
    return 1


def _pick_two_pass_lt(Bt, C, Lp, itemsize, target_bytes):
    """Largest 128-multiple divisor of Lp whose (Bt, C, Lt) tile <= target."""
    best = 128
    for cand in (256, 512, 1024, 2048, 4096):
        if Lp % cand == 0 and Bt * C * cand * itemsize <= target_bytes:
            best = cand
    return best


# ---------------------------------------------------------------- wrapper ----
def se_block(x, w1, w2, *, force_two_pass=False):
    """SEBlock forward.

    x  : (B, C, L)
    w1 : (H, C)  first Linear weight (PyTorch out x in), H = C // reduction
    w2 : (C, H)  second Linear weight (out x in)
    """
    B, C, L = x.shape
    H = w1.shape[0]
    assert w1.shape == (H, C) and w2.shape == (C, H)

    # Pre-transpose to (in, out) layout; zero-pad the hidden dim to a full
    # 128-lane tile (exact: padded columns feed zeros through ReLU, padded
    # rows of w2 are zero).  Kept f32 and VMEM-resident in every pass.
    Hp = ((H + 127) // 128) * 128
    w1_t = jnp.zeros((C, Hp), jnp.float32).at[:, :H].set(
        jnp.transpose(w1).astype(jnp.float32))
    w2_t = jnp.zeros((Hp, C), jnp.float32).at[:H, :].set(
        jnp.transpose(w2).astype(jnp.float32))
    w_bytes = 2 * C * Hp * 4

    itemsize = jnp.dtype(x.dtype).itemsize
    inv_l = 1.0 / float(L)
    slab_elems = B * C * L
    cap = _vmem_capacity_bytes()

    # ------------------------- fused single pass --------------------------
    fused_budget = min(int(cap * 0.35), 48 << 20)
    Bt = None if force_two_pass else _pick_fused_bt(B, C, L, itemsize,
                                                    fused_budget)
    if Bt is not None:
        nB = B // Bt
        tile_bytes = Bt * C * L * itemsize
        return pl.pallas_call(
            functools.partial(_se_fused_kernel, inv_l=inv_l),
            out_shape=jax.ShapeDtypeStruct((B, C, L), x.dtype),
            grid=(nB,),
            in_specs=[
                pl.BlockSpec((Bt, C, L), lambda b: (b, 0, 0)),
                pl.BlockSpec((C, Hp), lambda b: (0, 0)),
                pl.BlockSpec((Hp, C), lambda b: (0, 0)),
            ],
            out_specs=pl.BlockSpec((Bt, C, L), lambda b: (b, 0, 0)),
            compiler_params=pltpu.CompilerParams(
                dimension_semantics=("parallel",),
                vmem_limit_bytes=_clamp_vmem_limit(
                    4 * tile_bytes + w_bytes + (8 << 20), cap),
            ),
            cost_estimate=pl.CostEstimate(
                flops=int(2 * slab_elems + 4 * B * C * Hp),
                transcendentals=int(B * C),
                bytes_accessed=int(2 * slab_elems * itemsize + w_bytes),
            ),
        )(x, w1_t, w2_t)

    # ----------------------- two-pass fallback path ------------------------
    # Pad L to a multiple of 128 so every tile is lane-dense and pipelined
    # (zeros are exact for the sum; inv_l keeps the true L).
    Lp = ((L + 127) // 128) * 128
    x_p = x if Lp == L else jnp.pad(x, ((0, 0), (0, 0), (0, Lp - L)))

    Bt = _pick_two_pass_bt(B)
    Lt = _pick_two_pass_lt(Bt, C, Lp, itemsize, target_bytes=8 << 20)
    nB, nL = B // Bt, Lp // Lt
    tile_bytes = Bt * C * Lt * itemsize
    acc_bytes = Bt * C * 128 * 4
    gate_bytes = B * C * 4

    # ---- pass 1: gate s (B, C, 1) in f32 ---------------------------------
    gate = pl.pallas_call(
        functools.partial(_se_gate_kernel, inv_l=inv_l, n_chunks=Lt // 128),
        out_shape=jax.ShapeDtypeStruct((B, C, 1), jnp.float32),
        grid=(nB, nL),
        in_specs=[
            pl.BlockSpec((Bt, C, Lt), lambda b, l: (b, 0, l)),
            pl.BlockSpec((C, Hp), lambda b, l: (0, 0)),
            pl.BlockSpec((Hp, C), lambda b, l: (0, 0)),
        ],
        out_specs=pl.BlockSpec((Bt, C, 1), lambda b, l: (b, 0, 0)),
        scratch_shapes=[pltpu.VMEM((Bt, C, 128), jnp.float32)],
        compiler_params=pltpu.CompilerParams(
            dimension_semantics=("parallel", "arbitrary"),
            vmem_limit_bytes=_clamp_vmem_limit(
                2 * tile_bytes + w_bytes + acc_bytes + (8 << 20), cap),
        ),
        cost_estimate=pl.CostEstimate(
            flops=int(B * C * Lp + 4 * B * C * Hp),
            transcendentals=int(B * C),
            bytes_accessed=int(B * C * Lp * itemsize + w_bytes + gate_bytes),
        ),
    )(x_p, w1_t, w2_t)

    # ---- pass 2: rescale o = x * s (fully pipelined, lane-dense stores) ---
    out = pl.pallas_call(
        _se_scale_kernel,
        out_shape=jax.ShapeDtypeStruct((B, C, Lp), x.dtype),
        grid=(nB, nL),
        in_specs=[
            pl.BlockSpec((Bt, C, Lt), lambda b, l: (b, 0, l)),
            pl.BlockSpec((Bt, C, 1), lambda b, l: (b, 0, 0)),
        ],
        out_specs=pl.BlockSpec((Bt, C, Lt), lambda b, l: (b, 0, l)),
        compiler_params=pltpu.CompilerParams(
            dimension_semantics=("parallel", "parallel"),
            vmem_limit_bytes=_clamp_vmem_limit(4 * tile_bytes + (8 << 20), cap),
        ),
        cost_estimate=pl.CostEstimate(
            flops=int(B * C * Lp),
            transcendentals=0,
            bytes_accessed=int(2 * B * C * Lp * itemsize + gate_bytes),
        ),
    )(x_p, gate)
    return out if Lp == L else out[:, :, :L]


# -------------------------------------------------------------- reference ----
def _reference(x, w1, w2):
    y = jnp.mean(x.astype(jnp.float32), axis=-1)                   # (B, C)
    h = jnp.maximum(y @ w1.astype(jnp.float32).T, 0.0)             # (B, H)
    s = jax.nn.sigmoid(h @ w2.astype(jnp.float32).T)               # (B, C)
    return x * s.astype(x.dtype)[:, :, None]


# ------------------------------------------------------------------- main ----
if __name__ == "__main__":
    key = jax.random.PRNGKey(0)

    def run_case(B, C, L, reduction, dtype, force_two_pass=False):
        H = max(1, C // reduction)
        kx, k1, k2 = jax.random.split(
            jax.random.fold_in(key, B * 100003 + C * 131 + L), 3)
        x = jax.random.normal(kx, (B, C, L), dtype=jnp.float32).astype(dtype)
        w1 = jax.random.normal(k1, (H, C), dtype=jnp.float32) * (1.0 / jnp.sqrt(C))
        w2 = jax.random.normal(k2, (C, H), dtype=jnp.float32) * (1.0 / jnp.sqrt(H))

        out = jax.block_until_ready(
            se_block(x, w1, w2, force_two_pass=force_two_pass))
        ref = _reference(x, w1, w2)
        assert out.shape == x.shape and out.dtype == x.dtype
        tol = 1e-5 if dtype == jnp.float32 else 2e-2
        assert jnp.allclose(out.astype(jnp.float32), ref.astype(jnp.float32),
                            atol=tol, rtol=tol), \
            f"mismatch for {(B, C, L, dtype, force_two_pass)}"

    # Small shape consistent with the module (channel=32, reduction=16 -> H=2):
    # exercises the fused single-pass path.
    run_case(2, 32, 16, 16, jnp.float32)
    # Fused path, bf16, >= 2 batch tiles (megacore split).
    run_case(4, 32, 256, 16, jnp.bfloat16)
    # Two-pass fallback (forced): chunked L accumulation + (B, C, 1) gate.
    run_case(4, 64, 512, 16, jnp.float32, force_two_pass=True)
    # Two-pass fallback with L not a multiple of 128 (wrapper zero-pads L).
    run_case(2, 32, 200, 16, jnp.float32, force_two_pass=True)

    print("KERNEL_OK")
</pallas_src>

<mosaic_0001>
module attributes {stable_mosaic.version = 11 : i64} {
  func.func @_se_fused_kernel(%arg0: i32, %arg1: memref<1x32x16xf32, #tpu.memory_space<vmem>>, %arg2: memref<32x128xf32, #tpu.memory_space<vmem>>, %arg3: memref<128x32xf32, #tpu.memory_space<vmem>>, %arg4: memref<1x32x16xf32, #tpu.memory_space<vmem>>) attributes {dimension_semantics = [#tpu.dimension_semantics<parallel>], iteration_bounds = array<i64: 2>, scalar_prefetch = 0 : i64, scratch_operands = 0 : i64, tpu.core_type = #tpu.core_type<tc>, window_params = [{transform_indices = @transform_0, window_bounds = array<i64: 1, 32, 16>}, {pipeline_mode = #tpu.pipeline_mode<synchronous>, transform_indices = @transform_1, window_bounds = array<i64: 32, 128>}, {pipeline_mode = #tpu.pipeline_mode<synchronous>, transform_indices = @transform_2, window_bounds = array<i64: 128, 32>}, {transform_indices = @transform_3, window_bounds = array<i64: 1, 32, 16>}]} {
    %c0 = arith.constant 0 : index
    %c0_0 = arith.constant 0 : index
    %c0_1 = arith.constant 0 : index
    %0 = vector.load %arg1[%c0, %c0_0, %c0_1] : memref<1x32x16xf32, #tpu.memory_space<vmem>>, vector<1x32x16xf32>
    %cst = arith.constant dense<0.000000e+00> : vector<1x32xf32>
    %1 = vector.multi_reduction <add>, %0, %cst [2] : vector<1x32x16xf32> to vector<1x32xf32>
    %cst_2 = arith.constant 6.250000e-02 : f32
    %2 = vector.broadcast %cst_2 : f32 to vector<1x32xf32>
    %3 = arith.mulf %1, %2 : vector<1x32xf32>
    %c0_3 = arith.constant 0 : index
    %c0_4 = arith.constant 0 : index
    %4 = vector.load %arg2[%c0_3, %c0_4] : memref<32x128xf32, #tpu.memory_space<vmem>>, vector<32x128xf32>
    %cst_5 = arith.constant dense<0.000000e+00> : vector<1x128xf32>
    %5 = tpu.matmul %3, %4, %cst_5 {dimension_numbers = #tpu.dot_dimension_numbers<[1], [0], [0], [1], [0, 0, 1, 1], [], []>} : vector<1x32xf32>, vector<32x128xf32>, vector<1x128xf32> -> vector<1x128xf32>
    %cst_6 = arith.constant 0.000000e+00 : f32
    %6 = vector.broadcast %cst_6 : f32 to vector<1x128xf32>
    %7 = arith.maximumf %5, %6 : vector<1x128xf32>
    %c0_7 = arith.constant 0 : index
    %c0_8 = arith.constant 0 : index
    %8 = vector.load %arg3[%c0_7, %c0_8] : memref<128x32xf32, #tpu.memory_space<vmem>>, vector<128x32xf32>
    %cst_9 = arith.constant dense<0.000000e+00> : vector<1x32xf32>
    %9 = tpu.matmul %7, %8, %cst_9 {dimension_numbers = #tpu.dot_dimension_numbers<[1], [0], [0], [1], [0, 0, 1, 1], [], []>} : vector<1x128xf32>, vector<128x32xf32>, vector<1x32xf32> -> vector<1x32xf32>
    %10 = arith.negf %9 : vector<1x32xf32>
    %11 = math.exp %10 : vector<1x32xf32>
    %cst_10 = arith.constant 1.000000e+00 : f32
    %12 = vector.broadcast %cst_10 : f32 to vector<1x32xf32>
    %13 = arith.addf %12, %11 : vector<1x32xf32>
    %14 = arith.divf %12, %13 : vector<1x32xf32>
    %15 = vector.shape_cast %14 : vector<1x32xf32> to vector<1x32x1xf32>
    %16 = vector.broadcast %15 : vector<1x32x1xf32> to vector<1x32x16xf32>
    %17 = arith.mulf %0, %16 : vector<1x32x16xf32>
    %c0_11 = arith.constant 0 : index
    %c0_12 = arith.constant 0 : index
    %c0_13 = arith.constant 0 : index
    %18 = vector.load %arg4[%c0_11, %c0_12, %c0_13] : memref<1x32x16xf32, #tpu.memory_space<vmem>>, vector<1x32x16xf32>
    tpu.vector_store %arg4[%c0_11, %c0_12, %c0_13], %17 {strides = array<i32>} : memref<1x32x16xf32, #tpu.memory_space<vmem>>, vector<1x32x16xf32>,
    return
  }
  func.func @transform_0(%arg0: i32) -> (i32, i32, i32) {
    %c0_i32 = arith.constant 0 : i32
    %c0_i32_0 = arith.constant 0 : i32
    %c0_i32_1 = arith.constant 0 : i32
    return %arg0, %c0_i32, %c0_i32_0 : i32, i32, i32
  }
  func.func @transform_1(%arg0: i32) -> (i32, i32) {
    %c0_i32 = arith.constant 0 : i32
    %c0_i32_0 = arith.constant 0 : i32
    %c0_i32_1 = arith.constant 0 : i32
    return %c0_i32, %c0_i32_0 : i32, i32
  }
  func.func @transform_2(%arg0: i32) -> (i32, i32) {
    %c0_i32 = arith.constant 0 : i32
    %c0_i32_0 = arith.constant 0 : i32
    %c0_i32_1 = arith.constant 0 : i32
    return %c0_i32, %c0_i32_0 : i32, i32
  }
  func.func @transform_3(%arg0: i32) -> (i32, i32, i32) {
    %c0_i32 = arith.constant 0 : i32
    %c0_i32_0 = arith.constant 0 : i32
    %c0_i32_1 = arith.constant 0 : i32
    return %arg0, %c0_i32, %c0_i32_0 : i32, i32, i32
  }
}

</mosaic_0001>

<bundles_post_ra>
// kernel: tpu_custom_call.1
= control target key start
LH: loop header
LB: loop body
LE: loop exit
PB: predicated region body
PF: predicated region fallthrough
CT: control target
= control target key end

     0   :  { %s442_s12 = smov 0   ;;  %s550_s0 = inlined_call_operand.vmem [shape: f32[2,32,16], index: 0, kind: input, shape index: {}]   ;;  %s551_s1 = inlined_call_operand.vmem [shape: f32[32,128], index: 1, kind: input, shape index: {}]   ;;  %s552_s2 = inlined_call_operand.vmem [shape: f32[128,32], index: 2, kind: input, shape index: {}]   ;;  %s553_s3 = inlined_call_operand.vmem [shape: f32[2,32,16], index: 3, kind: output, shape index: {}]  }
   0x1 LB: > { %s382_s13 = sadd.s32 4294967295, %s420_s12   ;;  %p386_p0 = scmp.ge.s32.totalorder %s420_s12, 1  ;;  %s420_s12 = sphi %s442_s12, %s13_s12  }
   0x2   : > { %p137_p1 = scmp.lt.s32.totalorder %s420_s12, 3 }
   0x4   : > { %p138_p2 = pnand %p386_p0, %p137_p1 }
   0x5   : > { %p161_p3 = scmp.lt.s32.totalorder (!%p138_p2), %s382_s13, 1 }
   0x6   : > { %141 = sbr.rel (%p138_p2) target bundleno = 550 (0x226), region = 32 }
   0xb   : > { %s555_s13 = smov (!%p161_p3, %s382_s13), 1  ;;  %vm175_vm0 = vcmask 130048   ;;  %v195_v8 = vld [vmem:[%s551_s1 + $0x18] sm:$0xff]  ;;  %v194_v9 = vld [vmem:[%s551_s1 + $0x10] sm:$0xff]  ;;  %v193_v10 = vld [vmem:[%s551_s1 + $0x8] sm:$0xff]  ;;  %v200_v21 = vlaneseq  ;;  %vm205_vm1 = vcmask 130112  }
   0xc   : > { %s395_s14 = sshll.u32 %s555_s13, 5  ;;  %230 = vmatpush.msra.mxu0 %v195_v8  ;;  %v192_v11 = vld [vmem:[%s551_s1] sm:$0xff]  ;;  %v254_v12 = vld [vmem:[%s552_s2 + $0x78] sm:$0xff]  ;;  %v253_v13 = vld [vmem:[%s552_s2 + $0x70] sm:$0xff]  ;;  %vm209_vm2 = vcmask 195712   ;;  %vm213_vm3 = vcmask 261312  }
   0xd   : > { %s165_s17 = scalar_lea.vmem %s550_s0, %s395_s14  ;;  %255 = vmatpush.msra.mxu1 %v254_v12  ;;  %v252_v14 = vld [vmem:[%s552_s2 + $0x68] sm:$0xff]  ;;  %v251_v15 = vld [vmem:[%s552_s2 + $0x60] sm:$0xff]  ;;  %v250_v16 = vld [vmem:[%s552_s2 + $0x58] sm:$0xff]  ;;  %v201_v26 = vand.u32 127, %v200_v21  ;;  %vm215_vm4 = vcmask 261120   ;;  %v296_v50 = vshrl.u32 %v200_v21, 7  ;;  %s170_s9 = scalar_lea.vmem %s553_s3, %s395_s14 }
   0xe   : > { %v458_v0 = vld [vmem:[%s165_s17] sm:$0xff]  ;;  %v460_v1 = vld [vmem:[%s165_s17 + $0x10] sm:$0xff]  ;;  %v466_v4 = vld [vmem:[%s165_s17 + $0x8] sm:$0xff]  ;;  %231 = vmatpush.msra.mxu0 %v194_v9 }
   0xf   : > { %v176_v2 = vsel %vm175_vm0, %v458_v0, 0.0  ;;  %v182_v3 = vsel %vm175_vm0, %v460_v1, 0.0  ;;  %v468_v5 = vld [vmem:[%s165_s17 + $0x18] sm:$0xff]  ;;  %v179_v6 = vsel %vm175_vm0, %v466_v4, 0.0  ;;  %256 = vmatpush.msra.mxu1 %v253_v13  ;;  %v249_v17 = vld [vmem:[%s552_s2 + $0x50] sm:$0xff]  ;;  %v248_v18 = vld [vmem:[%s552_s2 + $0x48] sm:$0xff]  ;;  %405 = vset.pattern.permute.xlu2 %v296_v50 }
  0x10   : > { %177 = vadd.xlane.f32.xlu0 %v176_v2  ;;  %183 = vadd.xlane.f32.xlu1 %v182_v3  ;;  %v185_v7 = vsel %vm175_vm0, %v468_v5, 0.0  ;;  %v247_v19 = vld [vmem:[%s552_s2 + $0x40] sm:$0xff]  ;;  %v246_v20 = vld [vmem:[%s552_s2 + $0x38] sm:$0xff]  ;;  %v245_v24 = vld [vmem:[%s552_s2 + $0x30] sm:$0xff]  ;;  %v203_v30 = vadd.s32 4294967288, %v201_v26  ;;  %v211_v31 = vadd.s32 4294967272, %v201_v26 }
  0x11   : > { %232 = vmatpush.msra.mxu0 %v193_v10  ;;  %257 = vmatpush.msra.mxu1 %v252_v14  ;;  %v244_v25 = vld [vmem:[%s552_s2 + $0x28] sm:$0xff]  ;;  %v243_v27 = vld [vmem:[%s552_s2 + $0x20] sm:$0xff]  ;;  %v242_v28 = vld [vmem:[%s552_s2 + $0x18] sm:$0xff]  ;;  %v207_v32 = vadd.s32 4294967280, %v201_v26  ;;  %v315_v51 = vadd.s32 24, %v296_v50  ;;  %v309_v52 = vadd.s32 16, %v296_v50 }
  0x12   : > { %v241_v36 = vld [vmem:[%s552_s2 + $0x10] sm:$0xff]  ;;  %v240_v46 = vld [vmem:[%s552_s2 + $0x8] sm:$0xff]  ;;  %v239_v47 = vld [vmem:[%s552_s2] sm:$0xff]  ;;  %v303_v8 = vadd.s32 8, %v296_v50 }
  0x13   : > { %233 = vmatpush.msra.mxu0 %v192_v11  ;;  %258 = vmatpush.msra.mxu1 %v251_v15 }
  0x14   : > { %408 = vset.pattern.permute.xlu1 %v315_v51  ;;  %407 = vset.pattern.permute.xlu0 %v309_v52 }
  0x15   : > { %259 = vmatpush.msra.mxu1 %v250_v16 }
  0x17   : > { %260 = vmatpush.msra.mxu1 %v249_v17 }
  0x18   : > { %180 = vadd.xlane.f32.xlu0 %v179_v6  ;;  %186 = vadd.xlane.f32.xlu1 %v185_v7 }
  0x19   : > { %261 = vmatpush.msra.mxu1 %v248_v18 }
  0x1b   : > { %262 = vmatpush.msra.mxu1 %v247_v19 }
  0x1d   : > { %263 = vmatpush.msra.mxu1 %v246_v20 }
  0x1f   : > { %264 = vmatpush.msra.mxu1 %v245_v24 }
  0x21   : > { %265 = vmatpush.msra.mxu1 %v244_v25 }
  0x23   : > { %266 = vmatpush.msra.mxu1 %v243_v27 }
  0x25   : > { %267 = vmatpush.msra.mxu1 %v242_v28 }
  0x27   : > { %268 = vmatpush.msra.mxu1 %v241_v36 }
  0x29   : > { %269 = vmatpush.msra.mxu1 %v240_v46 }
  0x2b   : > { %270 = vmatpush.msra.mxu1 %v239_v47 }
  0x83   : > { %v178_v22 = vpop.xlane.xlu0 %177  ;;  %v184_v23 = vpop.xlane.xlu1 %183 }
  0x84   : > { %v188_v29 = vmul.f32 0.0625, %v178_v22  ;;  %v190_v33 = vmul.f32 0.0625, %v184_v23 }
  0x86   : > { %v202_v39 = vperm.slane %v188_v29, %v201_v26  ;;  %v208_v42 = vperm.slane %v190_v33, %v207_v32 }
  0x8b   : > { %v181_v34 = vpop.xlane.xlu0 %180  ;;  %v187_v35 = vpop.xlane.xlu1 %186 }
  0x8c   : > { %v189_v37 = vmul.f32 0.0625, %v181_v34  ;;  %v191_v38 = vmul.f32 0.0625, %v187_v35 }
  0x8e   : > { %v204_v40 = vperm.slane %v189_v37, %v203_v30  ;;  %v212_v41 = vperm.slane %v191_v38, %v211_v31 }
  0x90   : > { %v206_v43 = vsel %vm205_vm1, %v204_v40, %v202_v39 }
  0x91   : > { %v210_v44 = vsel %vm209_vm2, %v208_v42, %v206_v43 }
  0x92   : > { %v214_v45 = vsel %vm213_vm3, %v212_v41, %v210_v44 }
  0x93   : > { %391 = vmatmul.msk.f32.vlgmr.msra.gmra.mxu0 %vm215_vm4, %v214_v45 }
 0x110   : > { %v235_v48 = vpop.f32.mrf.mxu0 }
 0x111   : > { %v238_v49 = vmax.f32 %v235_v48, 0.0 }
 0x113   : > { %271 = vmatmul.f32.vlgmr.msra.gmra.mxu1 %v238_v49 }
 0x190   : > { %v272_v53 = vpop.f32.mrf.mxu1 }
 0x191   : > { %v392_v54 = vmul.f32 -1.442695, %v272_v53 }
 0x193   : > { %410 = vpow2.f32 %v392_v54 }
 0x199   : > { %v411_v55 = vpop.eup %410 }
 0x19a   : > { %v278_v56 = vadd.f32 1.0, %v411_v55 }
 0x19c   : > { %412 = vrcp.f32 %v278_v56  ;;  %v290_v60 = vand.u32 2147483648, %v278_v56  ;;  %v288_v62 = vand.u32 2147483647, %v278_v56  ;;  %vm284_vm6 = vweird.f32 %v278_v56 }
 0x19e   : > { %v291_v2 = vor.u32 1.1754944e-38, %v290_v60  ;;  %vm289_vm8 = vcmp.eq.f32.partialorder %v288_v62, 8.507059e+37 }
 0x1a2   : > { %v413_v57 = vpop.eup %412 }
 0x1a3   : > { %v280_v58 = vmul.f32 %v413_v57, %v278_v56  ;;  %vm285_vm5 = vweird.f32 %v413_v57 }
 0x1a4   : > { %vm286_vm7 = vmor %vm284_vm6, %vm285_vm5 }
 0x1a5   : > { %v281_v59 = vsub.f32 1.0, %v280_v58 }
 0x1a7   : > { %v282_v61 = vmul.f32 %v413_v57, %v281_v59 }
 0x1a9   : > { %v283_v63 = vadd.f32 %v413_v57, %v282_v61 }
 0x1ab   : > { %v287_v3 = vsel %vm286_vm7, %v413_v57, %v283_v63 }
 0x1ac   : > { %v292_v6 = vsel %vm289_vm8, %v291_v2, %v287_v3 }
 0x1ad   : > { %v294_v7 = vperm.slane %v292_v6, 0 }
 0x1af   : > { %317 = vperm.xlu1 %408, %v294_v7   ;;  %311 = vperm.xlu0 %407, %v294_v7  }
 0x1b0   : > { %299 = vperm.xlu2 %405, %v294_v7  }
 0x1b7   : > { %409 = vset.pattern.permute.xlu0 %v315_v51 }
 0x1b8   : > { %406 = vset.pattern.permute.xlu2 %v303_v8 }
 0x1c0   : > { %305 = vperm.xlu2 %406, %v294_v7  }
 0x20a   : > { %v300_v9 = vpop.permute.xlu2 %299 }
 0x20b   : > { %v319_v10 = vmul.f32 %v300_v9, %v458_v0 }
 0x20d   : > { %323 = vst.msk [vmem:[%s170_s9] sm:$0xff] %vm175_vm0, %v319_v10 }
 0x21a   : > { %v306_v11 = vpop.permute.xlu2 %305 }
 0x21b   : > { %v320_v12 = vmul.f32 %v306_v11, %v466_v4 }
 0x21d   : > { %324 = vst.msk [vmem:[%s170_s9 + $0x8] sm:$0xff] %vm175_vm0, %v320_v12 }
 0x221   : > { %v318_v13 = vpop.permute.xlu1 %317  ;;  %v312_v14 = vpop.permute.xlu0 %311 }
 0x222   : > { %v322_v15 = vmul.f32 %v318_v13, %v468_v5  ;;  %v321_v16 = vmul.f32 %v312_v14, %v460_v1 }
 0x224   : > { %326 = vst.msk [vmem:[%s170_s9 + $0x18] sm:$0xff] %vm175_vm0, %v322_v15 }
 0x225   : > { %325 = vst.msk [vmem:[%s170_s9 + $0x10] sm:$0xff] %vm175_vm0, %v321_v16 }
 0x226 PF: > { %s13_s12 = sadd.s32 1, %s420_s12  }
 0x227   : > { %p10_p4 = scmp.ge.s32.totalorder %s13_s12, 4  }
 0x229   :  { %12 = sbr.rel (!%p10_p4) target bundleno = 1 (0x1), region = 62 }

</bundles_post_ra>
